<compile_context>
chip_gen: v5e
topology: v5e:2x2
jax: 0.10.0
libtpu: 0.0.40
codegen_flags: <defaults>
</compile_context>

<pallas_src>
import functools

import jax
import jax.numpy as jnp
from jax.experimental import pallas as pl
from jax.experimental.pallas import tpu as pltpu


def bert_self_output_kernel(h_ref, x_ref, w_ref, b_ref, g_ref, beta_ref,
                            out_ref, *, eps: float):
    """One (TR, H) row-tile of BertSelfOutput.

    h_ref   : (TR, H) hidden_states tile (dense input, any float dtype)
    x_ref   : (TR, H) input_tensor tile (residual)
    w_ref   : (H, H)  bf16 weight, (in, out) layout  -> y = h @ W + b
    b_ref   : (1, H)  f32 bias
    g_ref   : (1, H)  f32 LayerNorm gamma
    beta_ref: (1, H)  f32 LayerNorm beta
    """
    # --- dense: bf16 operands on the MXU, f32 accumulation ------------------
    y = jnp.dot(h_ref[...].astype(jnp.bfloat16), w_ref[...],
                preferred_element_type=jnp.float32)
    y = y + b_ref[...].astype(jnp.float32)

    # dropout(p) is identity in eval mode
    # TODO(synk): training-mode dropout RNG not implemented (inference semantics).

    # --- residual add + LayerNorm (all f32) ---------------------------------
    y = y + x_ref[...].astype(jnp.float32)
    mu = jnp.mean(y, axis=-1, keepdims=True)
    yc = y - mu
    var = jnp.mean(yc * yc, axis=-1, keepdims=True)
    y = yc * jax.lax.rsqrt(var + eps)                         # EUP rsqrt
    y = y * g_ref[...].astype(jnp.float32) + beta_ref[...].astype(jnp.float32)

    out_ref[...] = y.astype(out_ref.dtype)


def _choose_tiling(rows: int):
    """Pick (TR, n_tiles, padded_rows).

    TR is always a multiple of 8.  The grid has at least 2 steps (so the
    pipeline double-buffers and each v7x TensorCore gets work), ideally >= 4,
    and an even step count so the "parallel" axis splits evenly across the
    two v7x TensorCores.  Rows are padded up to TR * n_tiles.
    """
    tr = 8
    for t in (512, 256, 128, 64, 32, 16, 8):
        if pl.cdiv(rows, t) >= 4:
            tr = t
            break
    n = max(pl.cdiv(rows, tr), 2)     # >= 2 pipeline steps
    if n % 2:
        n += 1                        # even split across v7x's two TCs
    return tr, n, tr * n


def prepare_params(params):
    """One-time parameter prep (hoisted out of the per-call wrapper):
    bf16 weight (halves resident VMEM, full-rate MXU), f32 (1, H) vectors."""
    H = params["w"].shape[0]
    return {
        "w": params["w"].astype(jnp.bfloat16),                # (H, H) = (in, out)
        "b": params["b"].reshape(1, H).astype(jnp.float32),
        "ln_g": params["ln_g"].reshape(1, H).astype(jnp.float32),
        "ln_b": params["ln_b"].reshape(1, H).astype(jnp.float32),
    }


def bert_self_output(hidden_states, input_tensor, prepared, *,
                     eps: float = 1e-12, out_dtype=None):
    """hidden_states, input_tensor: (B, S, H). `prepared` from prepare_params."""
    B, S, H = hidden_states.shape
    R = B * S
    TR, n_tiles, Rp = _choose_tiling(R)
    if out_dtype is None:
        out_dtype = input_tensor.dtype

    h2 = hidden_states.reshape(R, H)
    x2 = input_tensor.reshape(R, H)
    if Rp != R:                                              # pad tail rows with zeros
        h2 = jnp.pad(h2, ((0, Rp - R), (0, 0)))
        x2 = jnp.pad(x2, ((0, Rp - R), (0, 0)))

    w, b, g, beta = prepared["w"], prepared["b"], prepared["ln_g"], prepared["ln_b"]

    row_spec = pl.BlockSpec((TR, H), lambda i: (i, 0))
    const_spec = lambda shape: pl.BlockSpec(shape, lambda i: (0, 0))

    # VMEM budget: double-buffered row tiles (2 inputs + 1 output), the
    # (default) double-buffered constant operands, and the f32 LayerNorm
    # intermediates, plus headroom.
    h_bytes = TR * H * h2.dtype.itemsize
    x_bytes = TR * H * x2.dtype.itemsize
    o_bytes = TR * H * jnp.dtype(out_dtype).itemsize
    const_bytes = H * H * 2 + 3 * H * 4
    ln_scratch = 3 * TR * H * 4                              # y / yc f32 live values
    vmem_limit = 2 * (h_bytes + x_bytes + o_bytes) + 2 * const_bytes \
        + ln_scratch + (8 << 20)

    cost = pl.CostEstimate(
        flops=2 * Rp * H * H + 10 * Rp * H,                  # dense + bias/res/LN
        transcendentals=Rp,                                  # one rsqrt per row
        bytes_accessed=Rp * H * (h2.dtype.itemsize + x2.dtype.itemsize
                                 + jnp.dtype(out_dtype).itemsize) + const_bytes,
    )

    out = pl.pallas_call(
        functools.partial(bert_self_output_kernel, eps=eps),
        out_shape=jax.ShapeDtypeStruct((Rp, H), out_dtype),
        grid_spec=pltpu.PrefetchScalarGridSpec(
            num_scalar_prefetch=0,
            grid=(n_tiles,),
            in_specs=[
                row_spec,                # hidden_states tile
                row_spec,                # input_tensor tile (residual)
                const_spec((H, H)),      # weight (bf16, resident: constant index map)
                const_spec((1, H)),      # bias
                const_spec((1, H)),      # LN gamma
                const_spec((1, H)),      # LN beta
            ],
            out_specs=row_spec,
        ),
        compiler_params=pltpu.CompilerParams(
            dimension_semantics=("parallel",),
            vmem_limit_bytes=int(vmem_limit),
        ),
        cost_estimate=cost,
    )(h2, x2, w, b, g, beta)

    return out[:R].reshape(B, S, H)


def _reference(hidden_states, input_tensor, params, eps=1e-12):
    y = jnp.einsum("bsh,hk->bsk", hidden_states, params["w"]) + params["b"]
    y = y + input_tensor
    mu = jnp.mean(y, axis=-1, keepdims=True)
    var = jnp.mean((y - mu) ** 2, axis=-1, keepdims=True)
    return (y - mu) * jax.lax.rsqrt(var + eps) * params["ln_g"] + params["ln_b"]


def init_params(key, hidden):
    kw, = jax.random.split(key, 1)
    return {
        # (in, out) layout: y = x @ w + b  (PyTorch Linear weight pre-transposed)
        "w": jax.random.normal(kw, (hidden, hidden), jnp.float32) * 0.02,
        "b": jnp.zeros((hidden,), jnp.float32),
        "ln_g": jnp.ones((hidden,), jnp.float32),
        "ln_b": jnp.zeros((hidden,), jnp.float32),
    }


if __name__ == "__main__":
    # Toy correctness shapes.  Perf tuning (TR / VMEM / bf16 traffic) should be
    # re-checked at real BERT shapes (H=768/1024, S=128-512, H multiple of 128).
    B, S, H = 2, 8, 32

    key = jax.random.PRNGKey(0)
    kh, kx, kp = jax.random.split(key, 3)
    # hidden_states arrives in bf16 (as produced by the upstream attention
    # matmul) -- no wrapper-side f32->bf16 convert, bytes stream straight in.
    hidden_states = jax.random.normal(kh, (B, S, H), jnp.bfloat16)
    input_tensor = jax.random.normal(kx, (B, S, H), jnp.float32)
    params = init_params(kp, H)
    prepared = prepare_params(params)        # one-time prep, hoisted out of the call

    fwd = jax.jit(functools.partial(bert_self_output, eps=1e-12))
    out = fwd(hidden_states, input_tensor, prepared)
    out = jax.block_until_ready(out)
    assert out.shape == (B, S, H)
    assert out.dtype == jnp.float32

    ref = _reference(hidden_states.astype(jnp.float32), input_tensor, params)
    # bf16 matmul operands -> loose tolerance vs the f32 reference
    assert jnp.allclose(out, ref, rtol=5e-2, atol=5e-2), "mismatch vs reference"

    print("KERNEL_OK")
</pallas_src>

<mosaic_0001>
module attributes {stable_mosaic.version = 11 : i64} {
  func.func @bert_self_output_kernel(%arg0: i32, %arg1: memref<8x32xbf16, #tpu.memory_space<vmem>>, %arg2: memref<8x32xf32, #tpu.memory_space<vmem>>, %arg3: memref<32x32xbf16, #tpu.memory_space<vmem>>, %arg4: memref<1x32xf32, #tpu.memory_space<vmem>>, %arg5: memref<1x32xf32, #tpu.memory_space<vmem>>, %arg6: memref<1x32xf32, #tpu.memory_space<vmem>>, %arg7: memref<8x32xf32, #tpu.memory_space<vmem>>) attributes {dimension_semantics = [#tpu.dimension_semantics<parallel>], iteration_bounds = array<i64: 2>, scalar_prefetch = 0 : i64, scratch_operands = 0 : i64, tpu.core_type = #tpu.core_type<tc>, window_params = [{transform_indices = @transform_0, window_bounds = array<i64: 8, 32>}, {transform_indices = @transform_1, window_bounds = array<i64: 8, 32>}, {pipeline_mode = #tpu.pipeline_mode<synchronous>, transform_indices = @transform_2, window_bounds = array<i64: 32, 32>}, {pipeline_mode = #tpu.pipeline_mode<synchronous>, transform_indices = @transform_3, window_bounds = array<i64: 1, 32>}, {pipeline_mode = #tpu.pipeline_mode<synchronous>, transform_indices = @transform_4, window_bounds = array<i64: 1, 32>}, {pipeline_mode = #tpu.pipeline_mode<synchronous>, transform_indices = @transform_5, window_bounds = array<i64: 1, 32>}, {transform_indices = @transform_6, window_bounds = array<i64: 8, 32>}]} {
    %c0 = arith.constant 0 : index
    %c0_0 = arith.constant 0 : index
    %0 = vector.load %arg1[%c0, %c0_0] : memref<8x32xbf16, #tpu.memory_space<vmem>>, vector<8x32xbf16>
    %c0_1 = arith.constant 0 : index
    %c0_2 = arith.constant 0 : index
    %1 = vector.load %arg3[%c0_1, %c0_2] : memref<32x32xbf16, #tpu.memory_space<vmem>>, vector<32x32xbf16>
    %cst = arith.constant dense<0.000000e+00> : vector<8x32xf32>
    %2 = tpu.matmul %0, %1, %cst {dimension_numbers = #tpu.dot_dimension_numbers<[1], [0], [0], [1], [0, 0, 1, 1], [], []>} : vector<8x32xbf16>, vector<32x32xbf16>, vector<8x32xf32> -> vector<8x32xf32>
    %c0_3 = arith.constant 0 : index
    %c0_4 = arith.constant 0 : index
    %3 = vector.load %arg4[%c0_3, %c0_4] : memref<1x32xf32, #tpu.memory_space<vmem>>, vector<1x32xf32>
    %4 = vector.broadcast %3 : vector<1x32xf32> to vector<8x32xf32>
    %5 = arith.addf %2, %4 : vector<8x32xf32>
    %c0_5 = arith.constant 0 : index
    %c0_6 = arith.constant 0 : index
    %6 = vector.load %arg2[%c0_5, %c0_6] : memref<8x32xf32, #tpu.memory_space<vmem>>, vector<8x32xf32>
    %7 = arith.addf %5, %6 : vector<8x32xf32>
    %cst_7 = arith.constant dense<0.000000e+00> : vector<8xf32>
    %8 = vector.multi_reduction <add>, %7, %cst_7 [1] : vector<8x32xf32> to vector<8xf32>
    %9 = vector.shape_cast %8 : vector<8xf32> to vector<8x1xf32>
    %cst_8 = arith.constant 3.200000e+01 : f32
    %10 = vector.broadcast %cst_8 : f32 to vector<8x1xf32>
    %11 = arith.divf %9, %10 : vector<8x1xf32>
    %12 = vector.broadcast %11 : vector<8x1xf32> to vector<8x32xf32>
    %13 = arith.subf %7, %12 : vector<8x32xf32>
    %14 = arith.mulf %13, %13 : vector<8x32xf32>
    %cst_9 = arith.constant dense<0.000000e+00> : vector<8xf32>
    %15 = vector.multi_reduction <add>, %14, %cst_9 [1] : vector<8x32xf32> to vector<8xf32>
    %16 = vector.shape_cast %15 : vector<8xf32> to vector<8x1xf32>
    %cst_10 = arith.constant 3.200000e+01 : f32
    %17 = vector.broadcast %cst_10 : f32 to vector<8x1xf32>
    %18 = arith.divf %16, %17 : vector<8x1xf32>
    %cst_11 = arith.constant 9.99999996E-13 : f32
    %19 = vector.broadcast %cst_11 : f32 to vector<8x1xf32>
    %20 = arith.addf %18, %19 : vector<8x1xf32>
    %21 = math.rsqrt %20 : vector<8x1xf32>
    %22 = vector.broadcast %21 : vector<8x1xf32> to vector<8x32xf32>
    %23 = arith.mulf %13, %22 : vector<8x32xf32>
    %c0_12 = arith.constant 0 : index
    %c0_13 = arith.constant 0 : index
    %24 = vector.load %arg5[%c0_12, %c0_13] : memref<1x32xf32, #tpu.memory_space<vmem>>, vector<1x32xf32>
    %25 = vector.broadcast %24 : vector<1x32xf32> to vector<8x32xf32>
    %26 = arith.mulf %23, %25 : vector<8x32xf32>
    %c0_14 = arith.constant 0 : index
    %c0_15 = arith.constant 0 : index
    %27 = vector.load %arg6[%c0_14, %c0_15] : memref<1x32xf32, #tpu.memory_space<vmem>>, vector<1x32xf32>
    %28 = vector.broadcast %27 : vector<1x32xf32> to vector<8x32xf32>
    %29 = arith.addf %26, %28 : vector<8x32xf32>
    %c0_16 = arith.constant 0 : index
    %c0_17 = arith.constant 0 : index
    %30 = vector.load %arg7[%c0_16, %c0_17] : memref<8x32xf32, #tpu.memory_space<vmem>>, vector<8x32xf32>
    tpu.vector_store %arg7[%c0_16, %c0_17], %29 {strides = array<i32>} : memref<8x32xf32, #tpu.memory_space<vmem>>, vector<8x32xf32>,
    return
  }
  func.func @transform_0(%arg0: i32) -> (i32, i32) {
    %c0_i32 = arith.constant 0 : i32
    %c0_i32_0 = arith.constant 0 : i32
    return %arg0, %c0_i32 : i32, i32
  }
  func.func @transform_1(%arg0: i32) -> (i32, i32) {
    %c0_i32 = arith.constant 0 : i32
    %c0_i32_0 = arith.constant 0 : i32
    return %arg0, %c0_i32 : i32, i32
  }
  func.func @transform_2(%arg0: i32) -> (i32, i32) {
    %c0_i32 = arith.constant 0 : i32
    %c0_i32_0 = arith.constant 0 : i32
    %c0_i32_1 = arith.constant 0 : i32
    return %c0_i32, %c0_i32_0 : i32, i32
  }
  func.func @transform_3(%arg0: i32) -> (i32, i32) {
    %c0_i32 = arith.constant 0 : i32
    %c0_i32_0 = arith.constant 0 : i32
    %c0_i32_1 = arith.constant 0 : i32
    return %c0_i32, %c0_i32_0 : i32, i32
  }
  func.func @transform_4(%arg0: i32) -> (i32, i32) {
    %c0_i32 = arith.constant 0 : i32
    %c0_i32_0 = arith.constant 0 : i32
    %c0_i32_1 = arith.constant 0 : i32
    return %c0_i32, %c0_i32_0 : i32, i32
  }
  func.func @transform_5(%arg0: i32) -> (i32, i32) {
    %c0_i32 = arith.constant 0 : i32
    %c0_i32_0 = arith.constant 0 : i32
    %c0_i32_1 = arith.constant 0 : i32
    return %c0_i32, %c0_i32_0 : i32, i32
  }
  func.func @transform_6(%arg0: i32) -> (i32, i32) {
    %c0_i32 = arith.constant 0 : i32
    %c0_i32_0 = arith.constant 0 : i32
    return %arg0, %c0_i32 : i32, i32
  }
}

</mosaic_0001>

<bundles_post_ra>
// kernel: bert_self_output.1
= control target key start
LH: loop header
LB: loop body
LE: loop exit
PB: predicated region body
PF: predicated region fallthrough
CT: control target
= control target key end

     0   :  { %s1017_s0 = inlined_call_operand.hbm [shape: bf16[16,32], index: 0, kind: input, shape index: {}]   ;;  %s1018_s1 = inlined_call_operand.hbm [shape: f32[16,32], index: 1, kind: input, shape index: {}]   ;;  %s1019_s2 = inlined_call_operand.hbm [shape: bf16[32,32], index: 2, kind: input, shape index: {}]   ;;  %s1020_s3 = inlined_call_operand.vmem [shape: f32[1,32], index: 3, kind: input, shape index: {}]   ;;  %s1021_s4 = inlined_call_operand.vmem [shape: f32[1,32], index: 4, kind: input, shape index: {}]   ;;  %s1022_s5 = inlined_call_operand.vmem [shape: f32[1,32], index: 5, kind: input, shape index: {}]   ;;  %s1023_s6 = inlined_call_operand.hbm [shape: f32[16,32], index: 6, kind: output, shape index: {}]  }
   0x1   :  { %1028 = sst [smem:[#allocation17_spill]] %s1019_s2 }
   0x2   :  { %11 = vsyncpa [#allocation3], 0 }
   0x3   :  { %13 = vsyncpa [#allocation3 + $0x1], 0 }
   0x4   :  { %14 = vsyncpa [#allocation6], 0 }
   0x5   :  { %16 = vsyncpa [#allocation6 + $0x1], 0 }
   0x6   :  { %17 = vsyncpa [#allocation4], 0 }
   0x7   :  { %19 = vsyncpa [#allocation4 + $0x1], 0  ;;  %s828_s21 = smov 0   ;;  %s830_s22 = smov 0  }
   0x8   :  { %s832_s23 = smov 0   ;;  %s834_s24 = smov 0  }
   0x9 LB: > { %1029 = sst [smem:[#allocation13_spill]] %s783_s23  ;;  %s852_s28 = sadd.s32 4294967295, %s787_s24   ;;  %s787_s24 = sphi %s834_s24, %s1042_s24   ;;  %s783_s23 = sphi %s832_s23, %s1044_s23   ;;  %s779_s22 = sphi %s830_s22, %s1046_s22   ;;  %s775_s21 = sphi %s828_s21, %s1045_s21  }
   0xa   : > { %s1030_s2 = sld [smem:[#allocation17_spill]]  ;;  %p524_p0 = scmp.ge.s32.totalorder %s787_s24, 1 }
   0xb   : > { %p46_p1 = scmp.eq.s32.totalorder %s852_s28, 0  ;;  %p192_p2 = scmp.lt.s32.totalorder %s787_s24, 3 }
   0xc   : > { %s789_s30 = smov [#allocation7]   ;;  %s790_s8 = smov 64  }
   0xd   : > { %p857_p3 = pnand %p524_p0, %p192_p2  ;;  %s205_s7 = sshll.u32 %s789_s30, 4  ;;  %s206_s7 = int_to_ptr.vmem [resolvable:$true] %s205_s7 }
   0xe   : > { %s791_s9 = smov 4   ;;  %s523_s10 = sadd.s32 4294967294, %s787_s24  }
   0xf   : > { %p561_p4 = pneg %p857_p3  ;;  %s868_s11 = sadd.s32 1, %s787_s24  }
  0x10   : > { %s203_s27 = sshll.u32 %s1030_s2, 4  ;;  %1032 = sst [smem:[#allocation14_spill]] %s868_s11  ;;  %s204_s27 = int_to_ptr.hbm [resolvable:$true] %s203_s27 }
  0x11   : > { %p562_p6 = pnand %p561_p4, %p46_p1  ;;  %s32_s12 = sadd.s32 1, %s783_s23 }
  0x12   : > { %s29_s13 = ssub.s32 %s787_s24, %s868_s11  ;;  %p39_p7 = scmp.ne.s32.totalorder %s783_s23, %s779_s22 }
  0x13   : > { %564 = dma.hbm_to_vmem [thread:$0]  (!%p562_p6), %s204_s27, 256, %s206_s7, [#allocation6], %s790_s8, %s790_s8, %s791_s9  }
  0x14   : > { %p30_p8 = scmp.eq.s32.totalorder %s29_s13, 0  ;;  %p40_p9 = scmp.eq.s32.totalorder %s787_s24, 0 }
  0x15   : > { %p45_p10 = scmp.ne.s32.totalorder %s779_s22, %s775_s21  ;;  %p179_p11 = scmp.eq.s32.totalorder %s852_s28, 1 }
  0x16   : > { %s880_s14 = scalar_select %p30_p8, %s783_s23, %s32_s12  }
  0x17   : > { %p882_p12 = por %p40_p9, %p39_p7  ;;  %p888_p13 = por %p46_p1, %p45_p10 }
  0x18   : > { %1033 = sst [smem:[#allocation15_spill]] %s880_s14  ;;  %p892_p0 = por %p179_p11, %p39_p7 }
  0x19   : > { %p185_p2 = scmp.eq.s32.totalorder %s523_s10, 1  ;;  %p577_p4 = scmp.lt.s32.totalorder %s787_s24, 2 }
  0x1a   : > { %s898_s18 = sand.u32 1, %s783_s23   ;;  %s528_s25 = sshll.u32 %s787_s24, 2 }
  0x1b   : > { %p900_p6 = por %p185_p2, %p45_p10  ;;  %s527_s20 = sshll.u32 %s898_s18, 2 }
  0x1c   : > { %s236_s30 = scalar_lea.hbm %s1017_s0, %s528_s25  ;;  %s232_s8 = scalar_lea.vmem [#allocation2], %s527_s20 }
  0x1d   : > { %s1037_s19 = scalar_select %p900_p6, 1, 0 }
  0x1e   : > { %s238_s7 = sshll.u32 %s236_s30, 4  ;;  %s240_s9 = sshll.u32 %s232_s8, 4  ;;  %s239_s7 = int_to_ptr.hbm [resolvable:$true] %s238_s7  ;;  %s241_s9 = int_to_ptr.vmem [resolvable:$true] %s240_s9 }
  0x1f   : > { %1038 = sst [smem:[#allocation16_spill]] %s1037_s19  ;;  %p911_p7 = pnand %p577_p4, %p882_p12 }
  0x20   : > { %s247_s12 = sand.u32 1, %s787_s24   ;;  %s529_s13 = sshll.u32 %s898_s18, 3 }
  0x21   : > { %s229_s2 = scalar_lea.sflag [#allocation3], %s898_s18  ;;  %s653_s14 = sshra.s32 %s239_s7, 4  ;;  %s654_s14 = int_to_ptr.hbm [resolvable:$true] %s653_s14 }
  0x22   : > { %s655_s23 = scalar_lea.hbm %s654_s14, 4  ;;  %p657_p9 = pneg %p911_p7 }
  0x23   : > { %p656_p8 = scmp.ne.s32.totalorder %s654_s14, %s655_s23  ;;  %s660_s25 = scalar_lea.hbm %s1017_s0, 8 }
  0x24   : > { %p661_p12 = scmp.lt.s32.totalorder %s654_s14, %s1017_s0  ;;  %p662_p2 = scmp.lt.s32.totalorder %s660_s25, %s655_s23 }
  0x25   : > { %p658_p10 = pnand %p657_p9, %p656_p8 }
  0x26   : > { %p663_p4 = por %p662_p2, %p661_p12 }
  0x27   : > { %p659_p11 = pneg %p658_p10 }
  0x29   : > { %p664_p5 = pnand %p663_p4, %p659_p11 }
  0x2b   : > { %667 = shalt.err (!%p664_p5)
}
  0x2c   : > { %568 = dma.hbm_to_vmem [thread:$0]  (!%p911_p7), %s239_s7, 64, %s241_s9, %s229_s2  }
  0x2d   : > { %s530_s18 = sshll.u32 %s787_s24, 3  ;;  %s251_s30 = scalar_lea.vmem [#allocation5], %s529_s13 }
  0x2e   : > { %s259_s8 = sshll.u32 %s251_s30, 4  ;;  %s255_s15 = scalar_lea.hbm %s1018_s1, %s530_s18  ;;  %s260_s8 = int_to_ptr.vmem [resolvable:$true] %s259_s8 }
  0x2f   : > { %s257_s20 = sshll.u32 %s255_s15, 4  ;;  %s248_s14 = scalar_lea.sflag [#allocation6], %s247_s12  ;;  %s258_s20 = int_to_ptr.hbm [resolvable:$true] %s257_s20 }
  0x30   : > { %s683_s23 = sshra.s32 %s258_s20, 4  ;;  %s690_s9 = scalar_lea.hbm %s1018_s1, 16  ;;  %s684_s23 = int_to_ptr.hbm [resolvable:$true] %s683_s23 }
  0x31   : > { %s685_s25 = scalar_lea.hbm %s684_s23, 8  ;;  %p691_p11 = scmp.lt.s32.totalorder %s684_s23, %s1018_s1 }
  0x32   : > { %p686_p5 = scmp.ne.s32.totalorder %s684_s23, %s685_s25  ;;  %p692_p12 = scmp.lt.s32.totalorder %s690_s9, %s685_s25 }
  0x34   : > { %p688_p8 = pnand %p686_p5, %p657_p9  ;;  %p693_p2 = por %p692_p12, %p691_p11 }
  0x36   : > { %p689_p10 = pneg %p688_p8 }
  0x38   : > { %p694_p4 = pnand %p693_p2, %p689_p10 }
  0x3a   : > { %697 = shalt.err (!%p694_p4)
}
  0x3b   : > { %571 = dma.hbm_to_vmem [thread:$0]  (!%p911_p7), %s258_s20, 128, %s260_s8, %s248_s14  }
  0x3c   : > { %268 = sbr.rel (%p857_p3) target bundleno = 480 (0x1e0), region = 44  ;;  %s949_s11 = sand.u32 (!%p857_p3), 1, %s779_s22  }
  0x3d   : > { %s532_s19 = sshll.u32 (!%p857_p3), %s949_s11, 2  ;;  %s271_s12 = scalar_lea.sflag (!%p857_p3), [#allocation3], %s949_s11 }
  0x3e   : > { %s274_s27 = scalar_lea.vmem (!%p857_p3), [#allocation2], %s532_s19 }
  0x41   : > { %758 = dma.done.wait (%p888_p13), %s271_s12, 64  }
  0x42   : > { %760 = vsyncadd (%p888_p13), %s271_s12, 4294967232  ;;  %s280_s29 = sand.u32 1, %s852_s28   ;;  %s533_s10 = sshll.u32 %s949_s11, 3 }
  0x43   : > { %s281_s18 = scalar_lea.sflag [#allocation6], %s280_s29  ;;  %s284_s30 = scalar_lea.vmem [#allocation5], %s533_s10 }
  0x44   : > { %762 = dma.done.wait (%p888_p13), %s281_s18, 128  }
  0x45   : > { %764 = vsyncadd (%p888_p13), %s281_s18, 4294967168 }
  0x46   : > { %766 = dma.done.wait (%p46_p1), [#allocation6], 256  }
  0x47   : > { %768 = vsyncadd (%p46_p1), [#allocation6], 4294967040  ;;  %v550_v0 = vld [vmem:[#allocation7 + $0x8] sm:$0xff]  ;;  %v549_v1 = vld [vmem:[#allocation7] sm:$0xff]  ;;  %vm346_vm0 = vcmask 261120   ;;  %v792_v10 = vmov 32.0  }
  0x48   : > { %356 = vmatpush.bf16.msra.mxu0 %v550_v0  ;;  %v325_v2 = vld [vmem:[%s274_s27] sm:$0xf]  ;;  %v363_v5 = vld [vmem:[%s284_s30] sm:$0xff]  ;;  %619 = vrcp.f32 %v792_v10  ;;  %s546_s16 = sshll.u32 %s852_s28, 3  ;;  %s323_s28 = scalar_lea.vmem [#allocation8], %s533_s10 }
  0x49   : > { %v616_v3 = vld [vmem:[%s1020_s3] ss:$0 sm:$0xff]  ;;  %s416_s2 = scalar_lea.hbm %s1023_s6, %s546_s16  ;;  %s418_s13 = sshll.u32 %s323_s28, 4  ;;  %s419_s13 = int_to_ptr.vmem [resolvable:$true] %s418_s13 }
  0x4a   : > { %v617_v31 = vld [vmem:[%s1021_s4] ss:$0 sm:$0xff]  ;;  %s420_s26 = sshll.u32 %s416_s2, 4  ;;  %s406_s19 = scalar_lea.sflag [#allocation4], %s949_s11  ;;  %s421_s26 = int_to_ptr.hbm [resolvable:$true] %s420_s26 }
  0x4b   : > { %v618_v34 = vld [vmem:[%s1022_s5] ss:$0 sm:$0xff]  ;;  %s727_s12 = sshra.s32 %s421_s26, 4  ;;  %s733_s10 = scalar_lea.hbm %s1023_s6, 16  ;;  %s728_s12 = int_to_ptr.hbm [resolvable:$true] %s727_s12 }
  0x4c   : > { %357 = vmatpush.bf16.msra.mxu0 %v549_v1  ;;  %s729_s27 = scalar_lea.hbm %s728_s12, 8  ;;  %p734_p7 = scmp.lt.s32.totalorder %s728_s12, %s1023_s6 }
  0x4d   : > { %p730_p1 = scmp.ne.s32.totalorder %s728_s12, %s729_s27  ;;  %p735_p9 = scmp.lt.s32.totalorder %s733_s10, %s729_s27 }
  0x4e   : > { %v620_v11 = vpop.eup %619 }
  0x4f   : > { %544 = vmatmul.msk.bf16.vlgmr.msra.gmra.mxu0 %vm346_vm0, %v325_v2  ;;  %v369_v12 = vmul.f32 32.0, %v620_v11  ;;  %vm373_vm1 = vweird.f32 %v620_v11  ;;  %p731_p3 = pnand %p730_p1, %p892_p0  ;;  %p736_p5 = por %p735_p9, %p734_p7 }
  0x51   : > { %v370_v13 = vsub.f32 1.0, %v369_v12  ;;  %p732_p13 = pneg %p731_p3 }
  0x53   : > { %v371_v14 = vmul.f32 %v620_v11, %v370_v13  ;;  %p737_p8 = pnand %p736_p5, %p732_p13 }
  0x55   : > { %v372_v15 = vadd.f32 %v620_v11, %v371_v14 }
  0x57   : > { %v374_v16 = vsel %vm373_vm1, %v620_v11, %v372_v15 }
  0xcc   : > { %v359_v4 = vpop.f32.mrf.mxu0 }
  0xcd   : > { %v360_v6 = vadd.f32 %v616_v3, %v359_v4 }
  0xcf   : > { %v364_v7 = vadd.f32 %v363_v5, %v360_v6 }
  0xd1   : > { %v365_v8 = vsel %vm346_vm0, %v364_v7, 0.0 }
  0xd2   : > { %366 = vadd.xlane.f32.xlu0 %v365_v8 }
  0xd4   : > { %v361_v9 = vpop.f32.mrf.mxu0 }
 0x145   : > { %v367_v17 = vpop.xlane.xlu0 %366 }
 0x146   : > { %v375_v18 = vmul.f32 %v374_v16, %v367_v17 }
 0x148   : > { %v376_v19 = vsub.f32 %v364_v7, %v375_v18 }
 0x14a   : > { %v377_v20 = vmul.f32 %v376_v19, %v376_v19 }
 0x14c   : > { %v378_v21 = vsel %vm346_vm0, %v377_v20, 0.0 }
 0x14d   : > { %379 = vadd.xlane.f32.xlu0 %v378_v21 }
 0x1c0   : > { %v380_v22 = vpop.xlane.xlu0 %379 }
 0x1c1   : > { %v381_v23 = vmul.f32 %v380_v22, %v374_v16 }
 0x1c3   : > { %v382_v24 = vadd.f32 1e-12, %v381_v23 }
 0x1c5   : > { %621 = vrsqrt.f32 %v382_v24  ;;  %vm389_vm3 = vweird.f32 %v382_v24 }
 0x1cb   : > { %v622_v25 = vpop.eup %621 }
 0x1cc   : > { %v384_v26 = vmul.f32 %v622_v25, %v382_v24  ;;  %vm390_vm2 = vweird.f32 %v622_v25 }
 0x1cd   : > { %vm391_vm4 = vmor %vm389_vm3, %vm390_vm2 }
 0x1ce   : > { %v385_v27 = vmul.f32 %v622_v25, %v384_v26 }
 0x1d0   : > { %v386_v28 = vmul.f32 0.5, %v385_v27 }
 0x1d2   : > { %v387_v29 = vsub.f32 1.5, %v386_v28 }
 0x1d4   : > { %v388_v30 = vmul.f32 %v622_v25, %v387_v29 }
 0x1d6   : > { %v392_v32 = vsel %vm391_vm4, %v622_v25, %v388_v30 }
 0x1d7   : > { %v393_v33 = vmul.f32 %v392_v32, %v376_v19 }
 0x1d9   : > { %v398_v35 = vmul.f32 %v617_v31, %v393_v33 }
 0x1db   : > { %v403_v36 = vadd.f32 %v618_v34, %v398_v35 }
 0x1dd   : > { %404 = vst.msk [vmem:[%s323_s28] sm:$0xff] %vm346_vm0, %v403_v36 }
 0x1de   : > { %740 = shalt.err (!%p737_p8)
}
 0x1df   : > { %559 = dma.vmem_to_hbm [thread:$0]  (%p892_p0), %s419_s13, 128, %s421_s26, %s406_s19  }
 0x1e0 PF: > { %s432_s15 = sand.u32 1, %s775_s21   ;;  %p1041_p10 = scmp.ge.s32.totalorder %s787_s24, 2 }
 0x1e1   : > { %s433_s16 = scalar_lea.sflag [#allocation4], %s432_s15 }
 0x1e2   : > { %p573_p11 = pnand %p1041_p10, %p900_p6 }
 0x1e4   : > { %p574_p12 = pneg %p573_p11 }
 0x1e6   : > { %770 = dma.done.wait (%p574_p12), %s433_s16, 128  }
 0x1e7   : > { %772 = vsyncadd (%p574_p12), %s433_s16, 4294967168  ;;  %s1042_s24 = sld [smem:[#allocation14_spill]]  ;;  %s1045_s21 = smov %s779_s22 }
 0x1e8   : > { %s1043_s20 = sld [smem:[#allocation13_spill]] }
 0x1e9   : > { %s1044_s23 = sld [smem:[#allocation15_spill]] }
 0x1ed   : > { %p22_p2 = scmp.ge.s32.totalorder %s1042_s24, 4  }
 0x1ee   : > { %s1046_s22 = smov %s1043_s20 }
 0x1ef   :  { %24 = sbr.rel (!%p22_p2) target bundleno = 9 (0x9), region = 106 }
 0x1f4   :  { %439 = vsyncpa [#allocation3], 1 }
 0x1f5   :  { %441 = vsyncpa [#allocation3 + $0x1], 1 }
 0x1f6   :  { %442 = vsyncpa [#allocation6], 1 }
 0x1f7   :  { %444 = vsyncpa [#allocation6 + $0x1], 1 }
 0x1f8   :  { %445 = vsyncpa [#allocation4], 1 }
 0x1f9   :  { %447 = vsyncpa [#allocation4 + $0x1], 1 }

</bundles_post_ra>
